<compile_context>
chip_gen: v7x
topology: tpu7x:2x2x1
jax: 0.10.0
libtpu: 0.0.40
codegen_flags: <defaults>
</compile_context>

<pallas_src>
import jax
import jax.numpy as jnp
from jax.experimental import pallas as pl
from jax.experimental.pallas import tpu as pltpu


def lstm_kernel(x_ref, wx_ref, wh_ref, wph_ref, b_ref, bp_ref, p_ref,
                xproj_ref):
    # x_ref:  (T, B, 1)   per-timestep scalar inputs (input_dim == 1)
    # wx_ref: (1, 4H)     fused [Wix|Wfx|Wox|Wgx]
    # wh_ref: (H, 4H)     fused [Wih|Wfh|Woh|Wgh]
    # wph_ref:(H, C)      output projection
    # b_ref:  (1, 4H)     fused [bi|bf|bo|bg]
    # bp_ref: (1, C)
    # xproj_ref: VMEM scratch (T, B, 4H)
    T, B, _ = x_ref.shape
    H = wh_ref.shape[0]

    # Precompute input projection + bias for every timestep once, before the
    # serial recurrence: broadcast-mul on the VPU, not on the critical path.
    xproj_ref[...] = x_ref[...] * wx_ref[...][None, :, :] + b_ref[...][None, :, :]

    wh_all = wh_ref[...]  # hoisted: loaded once, reused every step

    def step(t, carry):
        h, c = carry
        # Single fused (B, H) x (H, 4H) MXU matmul -> lane-dense (B, 4H).
        pre = xproj_ref[t] + jnp.dot(h, wh_all,
                                     preferred_element_type=jnp.float32)
        # Gate order [i, f, o, g]: one sigmoid pass over the contiguous 3H
        # slab, one tanh pass over the last H columns (2 EUP round-trips).
        s = jax.nn.sigmoid(pre[:, : 3 * H])
        g = jnp.tanh(pre[:, 3 * H:])
        i = s[:, :H]
        f = s[:, H: 2 * H]
        o = s[:, 2 * H:]
        c_new = g * i + c * f
        h_new = jnp.tanh(c_new) * o
        return h_new, c_new

    h0 = jnp.zeros((B, H), jnp.float32)
    c0 = jnp.zeros((B, H), jnp.float32)
    # T is small and static -> fully unroll for cross-iteration scheduling.
    h, _ = jax.lax.fori_loop(0, T, step, (h0, c0), unroll=True)

    p_ref[...] = (jnp.dot(h, wph_ref[...], preferred_element_type=jnp.float32)
                  + bp_ref[...])


def lstm_forward(x, params):
    B, T = x.shape
    H = params["Wgh"].shape[0]
    C = params["Wph"].shape[1]

    # Fuse gate weights/biases once, outside the kernel. Order: [i, f, o, g].
    wx_all = jnp.concatenate(
        [params["Wix"], params["Wfx"], params["Wox"], params["Wgx"]], axis=1)
    wh_all = jnp.concatenate(
        [params["Wih"], params["Wfh"], params["Woh"], params["Wgh"]], axis=1)
    b_all = jnp.concatenate(
        [params["bi"], params["bf"], params["bo"], params["bg"]]).reshape(1, 4 * H)

    # (B, T) -> (T, B, 1): per-step access is a plain leading-axis row read.
    x_tb1 = jnp.transpose(x)[:, :, None].astype(jnp.float32)

    args = (
        x_tb1,
        wx_all, wh_all,
        params["Wph"],
        b_all,
        params["bp"].reshape(1, C),
    )
    vmem = pl.BlockSpec(memory_space=pltpu.MemorySpace.VMEM)
    return pl.pallas_call(
        lstm_kernel,
        out_shape=jax.ShapeDtypeStruct((B, C), jnp.float32),
        in_specs=[vmem] * len(args),
        out_specs=vmem,
        scratch_shapes=[pltpu.VMEM((T, B, 4 * H), jnp.float32)],
    )(*args)


def xavier_normal(key, shape):
    fan_in, fan_out = shape
    std = (2.0 / (fan_in + fan_out)) ** 0.5
    return std * jax.random.normal(key, shape, dtype=jnp.float32)


def init_params(key, input_dim, num_hidden, num_classes):
    ks = jax.random.split(key, 9)
    return {
        "Wgx": xavier_normal(ks[0], (input_dim, num_hidden)),
        "Wgh": xavier_normal(ks[1], (num_hidden, num_hidden)),
        "Wix": xavier_normal(ks[2], (input_dim, num_hidden)),
        "Wih": xavier_normal(ks[3], (num_hidden, num_hidden)),
        "Wfx": xavier_normal(ks[4], (input_dim, num_hidden)),
        "Wfh": xavier_normal(ks[5], (num_hidden, num_hidden)),
        "Wox": xavier_normal(ks[6], (input_dim, num_hidden)),
        "Woh": xavier_normal(ks[7], (num_hidden, num_hidden)),
        "Wph": xavier_normal(ks[8], (num_hidden, num_classes)),
        "bg": jnp.zeros((num_hidden,), jnp.float32),
        "bi": jnp.zeros((num_hidden,), jnp.float32),
        "bf": jnp.zeros((num_hidden,), jnp.float32),
        "bo": jnp.zeros((num_hidden,), jnp.float32),
        "bp": jnp.zeros((num_classes,), jnp.float32),
    }


def lstm_reference(x, params):
    """Pure-JAX reference matching the PyTorch forward exactly."""
    B, T = x.shape
    H = params["Wgh"].shape[0]
    h = jnp.zeros((B, H), jnp.float32)
    c = jnp.zeros((B, H), jnp.float32)
    for t in range(T):
        x_t = x[:, t:t + 1]  # (B, 1)
        g = jnp.tanh(x_t @ params["Wgx"] + h @ params["Wgh"] + params["bg"])
        i = jax.nn.sigmoid(x_t @ params["Wix"] + h @ params["Wih"] + params["bi"])
        f = jax.nn.sigmoid(x_t @ params["Wfx"] + h @ params["Wfh"] + params["bf"])
        o = jax.nn.sigmoid(x_t @ params["Wox"] + h @ params["Woh"] + params["bo"])
        c = g * i + c * f
        h = jnp.tanh(c) * o
    return h @ params["Wph"] + params["bp"]


if __name__ == "__main__":
    seq_length = 8
    input_dim = 1
    num_hidden = 32
    num_classes = 10
    batch_size = 8

    key = jax.random.PRNGKey(0)
    k_param, k_x = jax.random.split(key)
    params = init_params(k_param, input_dim, num_hidden, num_classes)
    # Synthetic "digit" sequence inputs, as in the palindrome task.
    x = jax.random.randint(k_x, (batch_size, seq_length), 0, 10).astype(jnp.float32)

    p = jax.block_until_ready(lstm_forward(x, params))
    p_ref = jax.block_until_ready(lstm_reference(x, params))

    assert p.shape == (batch_size, num_classes)
    # Fused gate matmul / reassociated bias add changes rounding order slightly.
    assert jnp.allclose(p, p_ref, atol=1e-4, rtol=1e-4), "mismatch vs reference"
    print("KERNEL_OK")
</pallas_src>

<mosaic_0001>
module attributes {stable_mosaic.version = 11 : i64} {
  func.func @lstm_kernel(%arg0: memref<8x8x1xf32, #tpu.memory_space<vmem>>, %arg1: memref<1x128xf32, #tpu.memory_space<vmem>>, %arg2: memref<32x128xf32, #tpu.memory_space<vmem>>, %arg3: memref<32x10xf32, #tpu.memory_space<vmem>>, %arg4: memref<1x128xf32, #tpu.memory_space<vmem>>, %arg5: memref<1x10xf32, #tpu.memory_space<vmem>>, %arg6: memref<8x10xf32, #tpu.memory_space<vmem>>, %arg7: memref<8x8x128xf32, #tpu.memory_space<vmem>>) attributes {dimension_semantics = [], scalar_prefetch = 0 : i64, scratch_operands = 1 : i64, tpu.core_type = #tpu.core_type<tc>} {
    %c0 = arith.constant 0 : index
    %c0_0 = arith.constant 0 : index
    %c0_1 = arith.constant 0 : index
    %0 = vector.load %arg0[%c0, %c0_0, %c0_1] : memref<8x8x1xf32, #tpu.memory_space<vmem>>, vector<8x8x1xf32>
    %c0_2 = arith.constant 0 : index
    %c0_3 = arith.constant 0 : index
    %1 = vector.load %arg1[%c0_2, %c0_3] : memref<1x128xf32, #tpu.memory_space<vmem>>, vector<1x128xf32>
    %2 = vector.shape_cast %1 : vector<1x128xf32> to vector<1x1x128xf32>
    %3 = vector.broadcast %0 : vector<8x8x1xf32> to vector<8x8x128xf32>
    %4 = vector.broadcast %2 : vector<1x1x128xf32> to vector<8x8x128xf32>
    %5 = arith.mulf %3, %4 : vector<8x8x128xf32>
    %c0_4 = arith.constant 0 : index
    %c0_5 = arith.constant 0 : index
    %6 = vector.load %arg4[%c0_4, %c0_5] : memref<1x128xf32, #tpu.memory_space<vmem>>, vector<1x128xf32>
    %7 = vector.shape_cast %6 : vector<1x128xf32> to vector<1x1x128xf32>
    %8 = vector.broadcast %7 : vector<1x1x128xf32> to vector<8x8x128xf32>
    %9 = arith.addf %5, %8 : vector<8x8x128xf32>
    %c0_6 = arith.constant 0 : index
    %c0_7 = arith.constant 0 : index
    %c0_8 = arith.constant 0 : index
    %10 = vector.load %arg7[%c0_6, %c0_7, %c0_8] : memref<8x8x128xf32, #tpu.memory_space<vmem>>, vector<8x8x128xf32>
    tpu.vector_store %arg7[%c0_6, %c0_7, %c0_8], %9 {strides = array<i32>} : memref<8x8x128xf32, #tpu.memory_space<vmem>>, vector<8x8x128xf32>,
    %c0_9 = arith.constant 0 : index
    %c0_10 = arith.constant 0 : index
    %11 = vector.load %arg2[%c0_9, %c0_10] : memref<32x128xf32, #tpu.memory_space<vmem>>, vector<32x128xf32>
    %cst = arith.constant 0.000000e+00 : f32
    %12 = vector.broadcast %cst : f32 to vector<8x32xf32>
    %cst_11 = arith.constant 0.000000e+00 : f32
    %13 = vector.broadcast %cst_11 : f32 to vector<8x32xf32>
    %c0_i32 = arith.constant 0 : i32
    %14 = arith.index_cast %c0_i32 : i32 to index
    %c0_12 = arith.constant 0 : index
    %c0_13 = arith.constant 0 : index
    %15 = vector.load %arg7[%14, %c0_12, %c0_13] : memref<8x8x128xf32, #tpu.memory_space<vmem>>, vector<1x8x128xf32>
    %16 = vector.shape_cast %15 : vector<1x8x128xf32> to vector<8x128xf32>
    %cst_14 = arith.constant dense<0.000000e+00> : vector<8x128xf32>
    %17 = tpu.matmul %12, %11, %cst_14 {dimension_numbers = #tpu.dot_dimension_numbers<[1], [0], [0], [1], [0, 0, 1, 1], [], []>} : vector<8x32xf32>, vector<32x128xf32>, vector<8x128xf32> -> vector<8x128xf32>
    %18 = arith.addf %16, %17 : vector<8x128xf32>
    %19 = vector.extract_strided_slice %18 {offsets = [0, 0], sizes = [8, 96], strides = [1, 1]} : vector<8x128xf32> to vector<8x96xf32>
    %20 = arith.negf %19 : vector<8x96xf32>
    %21 = math.exp %20 : vector<8x96xf32>
    %cst_15 = arith.constant 1.000000e+00 : f32
    %22 = vector.broadcast %cst_15 : f32 to vector<8x96xf32>
    %23 = arith.addf %22, %21 : vector<8x96xf32>
    %24 = arith.divf %22, %23 : vector<8x96xf32>
    %25 = vector.extract_strided_slice %18 {offsets = [0, 96], sizes = [8, 32], strides = [1, 1]} : vector<8x128xf32> to vector<8x32xf32>
    %26 = math.tanh %25 : vector<8x32xf32>
    %27 = vector.extract_strided_slice %24 {offsets = [0, 0], sizes = [8, 32], strides = [1, 1]} : vector<8x96xf32> to vector<8x32xf32>
    %28 = vector.extract_strided_slice %24 {offsets = [0, 32], sizes = [8, 32], strides = [1, 1]} : vector<8x96xf32> to vector<8x32xf32>
    %29 = vector.extract_strided_slice %24 {offsets = [0, 64], sizes = [8, 32], strides = [1, 1]} : vector<8x96xf32> to vector<8x32xf32>
    %30 = arith.mulf %26, %27 : vector<8x32xf32>
    %31 = arith.mulf %13, %28 : vector<8x32xf32>
    %32 = arith.addf %30, %31 : vector<8x32xf32>
    %33 = math.tanh %32 : vector<8x32xf32>
    %34 = arith.mulf %33, %29 : vector<8x32xf32>
    %c1_i32 = arith.constant 1 : i32
    %35 = arith.index_cast %c1_i32 : i32 to index
    %c0_16 = arith.constant 0 : index
    %c0_17 = arith.constant 0 : index
    %36 = vector.load %arg7[%35, %c0_16, %c0_17] : memref<8x8x128xf32, #tpu.memory_space<vmem>>, vector<1x8x128xf32>
    %37 = vector.shape_cast %36 : vector<1x8x128xf32> to vector<8x128xf32>
    %cst_18 = arith.constant dense<0.000000e+00> : vector<8x128xf32>
    %38 = tpu.matmul %34, %11, %cst_18 {dimension_numbers = #tpu.dot_dimension_numbers<[1], [0], [0], [1], [0, 0, 1, 1], [], []>} : vector<8x32xf32>, vector<32x128xf32>, vector<8x128xf32> -> vector<8x128xf32>
    %39 = arith.addf %37, %38 : vector<8x128xf32>
    %40 = vector.extract_strided_slice %39 {offsets = [0, 0], sizes = [8, 96], strides = [1, 1]} : vector<8x128xf32> to vector<8x96xf32>
    %41 = arith.negf %40 : vector<8x96xf32>
    %42 = math.exp %41 : vector<8x96xf32>
    %cst_19 = arith.constant 1.000000e+00 : f32
    %43 = vector.broadcast %cst_19 : f32 to vector<8x96xf32>
    %44 = arith.addf %43, %42 : vector<8x96xf32>
    %45 = arith.divf %43, %44 : vector<8x96xf32>
    %46 = vector.extract_strided_slice %39 {offsets = [0, 96], sizes = [8, 32], strides = [1, 1]} : vector<8x128xf32> to vector<8x32xf32>
    %47 = math.tanh %46 : vector<8x32xf32>
    %48 = vector.extract_strided_slice %45 {offsets = [0, 0], sizes = [8, 32], strides = [1, 1]} : vector<8x96xf32> to vector<8x32xf32>
    %49 = vector.extract_strided_slice %45 {offsets = [0, 32], sizes = [8, 32], strides = [1, 1]} : vector<8x96xf32> to vector<8x32xf32>
    %50 = vector.extract_strided_slice %45 {offsets = [0, 64], sizes = [8, 32], strides = [1, 1]} : vector<8x96xf32> to vector<8x32xf32>
    %51 = arith.mulf %47, %48 : vector<8x32xf32>
    %52 = arith.mulf %32, %49 : vector<8x32xf32>
    %53 = arith.addf %51, %52 : vector<8x32xf32>
    %54 = math.tanh %53 : vector<8x32xf32>
    %55 = arith.mulf %54, %50 : vector<8x32xf32>
    %c2_i32 = arith.constant 2 : i32
    %56 = arith.index_cast %c2_i32 : i32 to index
    %c0_20 = arith.constant 0 : index
    %c0_21 = arith.constant 0 : index
    %57 = vector.load %arg7[%56, %c0_20, %c0_21] : memref<8x8x128xf32, #tpu.memory_space<vmem>>, vector<1x8x128xf32>
    %58 = vector.shape_cast %57 : vector<1x8x128xf32> to vector<8x128xf32>
    %cst_22 = arith.constant dense<0.000000e+00> : vector<8x128xf32>
    %59 = tpu.matmul %55, %11, %cst_22 {dimension_numbers = #tpu.dot_dimension_numbers<[1], [0], [0], [1], [0, 0, 1, 1], [], []>} : vector<8x32xf32>, vector<32x128xf32>, vector<8x128xf32> -> vector<8x128xf32>
    %60 = arith.addf %58, %59 : vector<8x128xf32>
    %61 = vector.extract_strided_slice %60 {offsets = [0, 0], sizes = [8, 96], strides = [1, 1]} : vector<8x128xf32> to vector<8x96xf32>
    %62 = arith.negf %61 : vector<8x96xf32>
    %63 = math.exp %62 : vector<8x96xf32>
    %cst_23 = arith.constant 1.000000e+00 : f32
    %64 = vector.broadcast %cst_23 : f32 to vector<8x96xf32>
    %65 = arith.addf %64, %63 : vector<8x96xf32>
    %66 = arith.divf %64, %65 : vector<8x96xf32>
    %67 = vector.extract_strided_slice %60 {offsets = [0, 96], sizes = [8, 32], strides = [1, 1]} : vector<8x128xf32> to vector<8x32xf32>
    %68 = math.tanh %67 : vector<8x32xf32>
    %69 = vector.extract_strided_slice %66 {offsets = [0, 0], sizes = [8, 32], strides = [1, 1]} : vector<8x96xf32> to vector<8x32xf32>
    %70 = vector.extract_strided_slice %66 {offsets = [0, 32], sizes = [8, 32], strides = [1, 1]} : vector<8x96xf32> to vector<8x32xf32>
    %71 = vector.extract_strided_slice %66 {offsets = [0, 64], sizes = [8, 32], strides = [1, 1]} : vector<8x96xf32> to vector<8x32xf32>
    %72 = arith.mulf %68, %69 : vector<8x32xf32>
    %73 = arith.mulf %53, %70 : vector<8x32xf32>
    %74 = arith.addf %72, %73 : vector<8x32xf32>
    %75 = math.tanh %74 : vector<8x32xf32>
    %76 = arith.mulf %75, %71 : vector<8x32xf32>
    %c3_i32 = arith.constant 3 : i32
    %77 = arith.index_cast %c3_i32 : i32 to index
    %c0_24 = arith.constant 0 : index
    %c0_25 = arith.constant 0 : index
    %78 = vector.load %arg7[%77, %c0_24, %c0_25] : memref<8x8x128xf32, #tpu.memory_space<vmem>>, vector<1x8x128xf32>
    %79 = vector.shape_cast %78 : vector<1x8x128xf32> to vector<8x128xf32>
    %cst_26 = arith.constant dense<0.000000e+00> : vector<8x128xf32>
    %80 = tpu.matmul %76, %11, %cst_26 {dimension_numbers = #tpu.dot_dimension_numbers<[1], [0], [0], [1], [0, 0, 1, 1], [], []>} : vector<8x32xf32>, vector<32x128xf32>, vector<8x128xf32> -> vector<8x128xf32>
    %81 = arith.addf %79, %80 : vector<8x128xf32>
    %82 = vector.extract_strided_slice %81 {offsets = [0, 0], sizes = [8, 96], strides = [1, 1]} : vector<8x128xf32> to vector<8x96xf32>
    %83 = arith.negf %82 : vector<8x96xf32>
    %84 = math.exp %83 : vector<8x96xf32>
    %cst_27 = arith.constant 1.000000e+00 : f32
    %85 = vector.broadcast %cst_27 : f32 to vector<8x96xf32>
    %86 = arith.addf %85, %84 : vector<8x96xf32>
    %87 = arith.divf %85, %86 : vector<8x96xf32>
    %88 = vector.extract_strided_slice %81 {offsets = [0, 96], sizes = [8, 32], strides = [1, 1]} : vector<8x128xf32> to vector<8x32xf32>
    %89 = math.tanh %88 : vector<8x32xf32>
    %90 = vector.extract_strided_slice %87 {offsets = [0, 0], sizes = [8, 32], strides = [1, 1]} : vector<8x96xf32> to vector<8x32xf32>
    %91 = vector.extract_strided_slice %87 {offsets = [0, 32], sizes = [8, 32], strides = [1, 1]} : vector<8x96xf32> to vector<8x32xf32>
    %92 = vector.extract_strided_slice %87 {offsets = [0, 64], sizes = [8, 32], strides = [1, 1]} : vector<8x96xf32> to vector<8x32xf32>
    %93 = arith.mulf %89, %90 : vector<8x32xf32>
    %94 = arith.mulf %74, %91 : vector<8x32xf32>
    %95 = arith.addf %93, %94 : vector<8x32xf32>
    %96 = math.tanh %95 : vector<8x32xf32>
    %97 = arith.mulf %96, %92 : vector<8x32xf32>
    %c4_i32 = arith.constant 4 : i32
    %98 = arith.index_cast %c4_i32 : i32 to index
    %c0_28 = arith.constant 0 : index
    %c0_29 = arith.constant 0 : index
    %99 = vector.load %arg7[%98, %c0_28, %c0_29] : memref<8x8x128xf32, #tpu.memory_space<vmem>>, vector<1x8x128xf32>
    %100 = vector.shape_cast %99 : vector<1x8x128xf32> to vector<8x128xf32>
    %cst_30 = arith.constant dense<0.000000e+00> : vector<8x128xf32>
    %101 = tpu.matmul %97, %11, %cst_30 {dimension_numbers = #tpu.dot_dimension_numbers<[1], [0], [0], [1], [0, 0, 1, 1], [], []>} : vector<8x32xf32>, vector<32x128xf32>, vector<8x128xf32> -> vector<8x128xf32>
    %102 = arith.addf %100, %101 : vector<8x128xf32>
    %103 = vector.extract_strided_slice %102 {offsets = [0, 0], sizes = [8, 96], strides = [1, 1]} : vector<8x128xf32> to vector<8x96xf32>
    %104 = arith.negf %103 : vector<8x96xf32>
    %105 = math.exp %104 : vector<8x96xf32>
    %cst_31 = arith.constant 1.000000e+00 : f32
    %106 = vector.broadcast %cst_31 : f32 to vector<8x96xf32>
    %107 = arith.addf %106, %105 : vector<8x96xf32>
    %108 = arith.divf %106, %107 : vector<8x96xf32>
    %109 = vector.extract_strided_slice %102 {offsets = [0, 96], sizes = [8, 32], strides = [1, 1]} : vector<8x128xf32> to vector<8x32xf32>
    %110 = math.tanh %109 : vector<8x32xf32>
    %111 = vector.extract_strided_slice %108 {offsets = [0, 0], sizes = [8, 32], strides = [1, 1]} : vector<8x96xf32> to vector<8x32xf32>
    %112 = vector.extract_strided_slice %108 {offsets = [0, 32], sizes = [8, 32], strides = [1, 1]} : vector<8x96xf32> to vector<8x32xf32>
    %113 = vector.extract_strided_slice %108 {offsets = [0, 64], sizes = [8, 32], strides = [1, 1]} : vector<8x96xf32> to vector<8x32xf32>
    %114 = arith.mulf %110, %111 : vector<8x32xf32>
    %115 = arith.mulf %95, %112 : vector<8x32xf32>
    %116 = arith.addf %114, %115 : vector<8x32xf32>
    %117 = math.tanh %116 : vector<8x32xf32>
    %118 = arith.mulf %117, %113 : vector<8x32xf32>
    %c5_i32 = arith.constant 5 : i32
    %119 = arith.index_cast %c5_i32 : i32 to index
    %c0_32 = arith.constant 0 : index
    %c0_33 = arith.constant 0 : index
    %120 = vector.load %arg7[%119, %c0_32, %c0_33] : memref<8x8x128xf32, #tpu.memory_space<vmem>>, vector<1x8x128xf32>
    %121 = vector.shape_cast %120 : vector<1x8x128xf32> to vector<8x128xf32>
    %cst_34 = arith.constant dense<0.000000e+00> : vector<8x128xf32>
    %122 = tpu.matmul %118, %11, %cst_34 {dimension_numbers = #tpu.dot_dimension_numbers<[1], [0], [0], [1], [0, 0, 1, 1], [], []>} : vector<8x32xf32>, vector<32x128xf32>, vector<8x128xf32> -> vector<8x128xf32>
    %123 = arith.addf %121, %122 : vector<8x128xf32>
    %124 = vector.extract_strided_slice %123 {offsets = [0, 0], sizes = [8, 96], strides = [1, 1]} : vector<8x128xf32> to vector<8x96xf32>
    %125 = arith.negf %124 : vector<8x96xf32>
    %126 = math.exp %125 : vector<8x96xf32>
    %cst_35 = arith.constant 1.000000e+00 : f32
    %127 = vector.broadcast %cst_35 : f32 to vector<8x96xf32>
    %128 = arith.addf %127, %126 : vector<8x96xf32>
    %129 = arith.divf %127, %128 : vector<8x96xf32>
    %130 = vector.extract_strided_slice %123 {offsets = [0, 96], sizes = [8, 32], strides = [1, 1]} : vector<8x128xf32> to vector<8x32xf32>
    %131 = math.tanh %130 : vector<8x32xf32>
    %132 = vector.extract_strided_slice %129 {offsets = [0, 0], sizes = [8, 32], strides = [1, 1]} : vector<8x96xf32> to vector<8x32xf32>
    %133 = vector.extract_strided_slice %129 {offsets = [0, 32], sizes = [8, 32], strides = [1, 1]} : vector<8x96xf32> to vector<8x32xf32>
    %134 = vector.extract_strided_slice %129 {offsets = [0, 64], sizes = [8, 32], strides = [1, 1]} : vector<8x96xf32> to vector<8x32xf32>
    %135 = arith.mulf %131, %132 : vector<8x32xf32>
    %136 = arith.mulf %116, %133 : vector<8x32xf32>
    %137 = arith.addf %135, %136 : vector<8x32xf32>
    %138 = math.tanh %137 : vector<8x32xf32>
    %139 = arith.mulf %138, %134 : vector<8x32xf32>
    %c6_i32 = arith.constant 6 : i32
    %140 = arith.index_cast %c6_i32 : i32 to index
    %c0_36 = arith.constant 0 : index
    %c0_37 = arith.constant 0 : index
    %141 = vector.load %arg7[%140, %c0_36, %c0_37] : memref<8x8x128xf32, #tpu.memory_space<vmem>>, vector<1x8x128xf32>
    %142 = vector.shape_cast %141 : vector<1x8x128xf32> to vector<8x128xf32>
    %cst_38 = arith.constant dense<0.000000e+00> : vector<8x128xf32>
    %143 = tpu.matmul %139, %11, %cst_38 {dimension_numbers = #tpu.dot_dimension_numbers<[1], [0], [0], [1], [0, 0, 1, 1], [], []>} : vector<8x32xf32>, vector<32x128xf32>, vector<8x128xf32> -> vector<8x128xf32>
    %144 = arith.addf %142, %143 : vector<8x128xf32>
    %145 = vector.extract_strided_slice %144 {offsets = [0, 0], sizes = [8, 96], strides = [1, 1]} : vector<8x128xf32> to vector<8x96xf32>
    %146 = arith.negf %145 : vector<8x96xf32>
    %147 = math.exp %146 : vector<8x96xf32>
    %cst_39 = arith.constant 1.000000e+00 : f32
    %148 = vector.broadcast %cst_39 : f32 to vector<8x96xf32>
    %149 = arith.addf %148, %147 : vector<8x96xf32>
    %150 = arith.divf %148, %149 : vector<8x96xf32>
    %151 = vector.extract_strided_slice %144 {offsets = [0, 96], sizes = [8, 32], strides = [1, 1]} : vector<8x128xf32> to vector<8x32xf32>
    %152 = math.tanh %151 : vector<8x32xf32>
    %153 = vector.extract_strided_slice %150 {offsets = [0, 0], sizes = [8, 32], strides = [1, 1]} : vector<8x96xf32> to vector<8x32xf32>
    %154 = vector.extract_strided_slice %150 {offsets = [0, 32], sizes = [8, 32], strides = [1, 1]} : vector<8x96xf32> to vector<8x32xf32>
    %155 = vector.extract_strided_slice %150 {offsets = [0, 64], sizes = [8, 32], strides = [1, 1]} : vector<8x96xf32> to vector<8x32xf32>
    %156 = arith.mulf %152, %153 : vector<8x32xf32>
    %157 = arith.mulf %137, %154 : vector<8x32xf32>
    %158 = arith.addf %156, %157 : vector<8x32xf32>
    %159 = math.tanh %158 : vector<8x32xf32>
    %160 = arith.mulf %159, %155 : vector<8x32xf32>
    %c7_i32 = arith.constant 7 : i32
    %161 = arith.index_cast %c7_i32 : i32 to index
    %c0_40 = arith.constant 0 : index
    %c0_41 = arith.constant 0 : index
    %162 = vector.load %arg7[%161, %c0_40, %c0_41] : memref<8x8x128xf32, #tpu.memory_space<vmem>>, vector<1x8x128xf32>
    %163 = vector.shape_cast %162 : vector<1x8x128xf32> to vector<8x128xf32>
    %cst_42 = arith.constant dense<0.000000e+00> : vector<8x128xf32>
    %164 = tpu.matmul %160, %11, %cst_42 {dimension_numbers = #tpu.dot_dimension_numbers<[1], [0], [0], [1], [0, 0, 1, 1], [], []>} : vector<8x32xf32>, vector<32x128xf32>, vector<8x128xf32> -> vector<8x128xf32>
    %165 = arith.addf %163, %164 : vector<8x128xf32>
    %166 = vector.extract_strided_slice %165 {offsets = [0, 0], sizes = [8, 96], strides = [1, 1]} : vector<8x128xf32> to vector<8x96xf32>
    %167 = arith.negf %166 : vector<8x96xf32>
    %168 = math.exp %167 : vector<8x96xf32>
    %cst_43 = arith.constant 1.000000e+00 : f32
    %169 = vector.broadcast %cst_43 : f32 to vector<8x96xf32>
    %170 = arith.addf %169, %168 : vector<8x96xf32>
    %171 = arith.divf %169, %170 : vector<8x96xf32>
    %172 = vector.extract_strided_slice %165 {offsets = [0, 96], sizes = [8, 32], strides = [1, 1]} : vector<8x128xf32> to vector<8x32xf32>
    %173 = math.tanh %172 : vector<8x32xf32>
    %174 = vector.extract_strided_slice %171 {offsets = [0, 0], sizes = [8, 32], strides = [1, 1]} : vector<8x96xf32> to vector<8x32xf32>
    %175 = vector.extract_strided_slice %171 {offsets = [0, 32], sizes = [8, 32], strides = [1, 1]} : vector<8x96xf32> to vector<8x32xf32>
    %176 = vector.extract_strided_slice %171 {offsets = [0, 64], sizes = [8, 32], strides = [1, 1]} : vector<8x96xf32> to vector<8x32xf32>
    %177 = arith.mulf %173, %174 : vector<8x32xf32>
    %178 = arith.mulf %158, %175 : vector<8x32xf32>
    %179 = arith.addf %177, %178 : vector<8x32xf32>
    %180 = math.tanh %179 : vector<8x32xf32>
    %181 = arith.mulf %180, %176 : vector<8x32xf32>
    %c8_i32 = arith.constant 8 : i32
    %c0_44 = arith.constant 0 : index
    %c0_45 = arith.constant 0 : index
    %182 = vector.load %arg3[%c0_44, %c0_45] : memref<32x10xf32, #tpu.memory_space<vmem>>, vector<32x10xf32>
    %cst_46 = arith.constant dense<0.000000e+00> : vector<8x10xf32>
    %183 = tpu.matmul %181, %182, %cst_46 {dimension_numbers = #tpu.dot_dimension_numbers<[1], [0], [0], [1], [0, 0, 1, 1], [], []>} : vector<8x32xf32>, vector<32x10xf32>, vector<8x10xf32> -> vector<8x10xf32>
    %c0_47 = arith.constant 0 : index
    %c0_48 = arith.constant 0 : index
    %184 = vector.load %arg5[%c0_47, %c0_48] : memref<1x10xf32, #tpu.memory_space<vmem>>, vector<1x10xf32>
    %185 = vector.broadcast %184 : vector<1x10xf32> to vector<8x10xf32>
    %186 = arith.addf %183, %185 : vector<8x10xf32>
    %c0_49 = arith.constant 0 : index
    %c0_50 = arith.constant 0 : index
    %187 = vector.load %arg6[%c0_49, %c0_50] : memref<8x10xf32, #tpu.memory_space<vmem>>, vector<8x10xf32>
    tpu.vector_store %arg6[%c0_49, %c0_50], %186 {strides = array<i32>} : memref<8x10xf32, #tpu.memory_space<vmem>>, vector<8x10xf32>,
    return
  }
}

</mosaic_0001>

<bundles_post_ra>
// kernel: tpu_custom_call.1
= control target key start
LH: loop header
LB: loop body
LE: loop exit
PB: predicated region body
PF: predicated region fallthrough
CT: control target
= control target key end

     0   :  { %v1330_v3 = vmov 0.0|0.0   ;;  %vm1331_vm0 = vmmov 0   ;;  %v1332_v6 = vmov 0.0   ;;  %v1333_v8 = vmov 0   ;;  %s1559_s0 = inlined_call_operand.vmem [shape: f32[8,8,1], index: 0, kind: input, shape index: {}]   ;;  %s1560_s1 = inlined_call_operand.vmem [shape: f32[1,128], index: 1, kind: input, shape index: {}]   ;;  %s1561_s2 = inlined_call_operand.vmem [shape: f32[32,128], index: 2, kind: input, shape index: {}]   ;;  %s1562_s3 = inlined_call_operand.vmem [shape: f32[32,10], index: 3, kind: input, shape index: {}]   ;;  %s1563_s4 = inlined_call_operand.vmem [shape: f32[1,128], index: 4, kind: input, shape index: {}]   ;;  %s1564_s5 = inlined_call_operand.vmem [shape: f32[1,10], index: 5, kind: input, shape index: {}]   ;;  %s1565_s6 = inlined_call_operand.hbm [shape: f32[8,10], index: 6, kind: output, shape index: {}]  }
   0x1   :  { %v110_v0 = vld [vmem:[%s1561_s2] sm:$0xff]  ;;  %v111_v1 = vld [vmem:[%s1561_s2 + $0x8] sm:$0xff]  ;;  %v112_v2 = vld [vmem:[%s1561_s2 + $0x10] sm:$0xff]  ;;  %1178 = vmatprep.subr.bf16.mxu0 %v1330_v3  ;;  %1087 = vmatprep.mubr.msk.f32.mxu0 %vm1331_vm0, %v1332_v6 }
   0x2   :  { %v1383_v4 = vpack.c.bf16 %v111_v1, %v110_v0  ;;  %v113_v5 = vld [vmem:[%s1561_s2 + $0x18] sm:$0xff]  ;;  %v24_v7 = vld [vmem:[%s1559_s0] sm:$0xff]  ;;  %1240 = vset.pattern.permute.xlu0 %v1333_v8  ;;  %1184 = vmatprep.subr.bf16.mxu1 %v1330_v3 }
   0x3   :  { %11 = vsyncpa [#allocation4], 0  ;;  %v1395_v9 = vpack.c.bf16 %v113_v5, %v112_v2  ;;  %35 = vperm.xlu0 %1240, %v24_v7   ;;  %1098 = vmatprep.mubr.msk.f32.mxu1 %vm1331_vm0, %v1332_v6  ;;  %v1416_v10 = vld [vmem:[%s1560_s1] ss:$0 sm:$0xff]  ;;  %s1334_s1 = smov 96   ;;  %s1335_s10 = smov 64  }
   0x4   :  { %1180 = vmatpush3.bf16.msra.mxu0 %v1383_v4  ;;  %1186 = vmatpush3.bf16.msra.mxu1 %v1383_v4  ;;  %v1422_v13 = vld [vmem:[%s1563_s4] ss:$0 sm:$0xff]  ;;  %s1336_s4 = smov 32   ;;  %v25_v28 = vld [vmem:[%s1559_s0 + $0x8] sm:$0xff]  ;;  %vm115_vm1 = vcmask 261120   ;;  %v26_v43 = vld [vmem:[%s1559_s0 + $0x10] sm:$0xff] }
   0x5   :  { %1181 = vmatprep.subr.bf16.mxu0 %v1330_v3  ;;  %1187 = vmatprep.subr.bf16.mxu1 %v1330_v3  ;;  %v27_v0 = vld [vmem:[%s1559_s0 + $0x18] sm:$0xff]  ;;  %s1337_s8 = smov [#allocation3]   ;;  %vm999_vm2 = vcmask 80896  }
   0x6   :  { %1241 = vset.pattern.permute.xlu1 %v1333_v8  ;;  %s1007_s9 = sshll.u32 %s1337_s8, 4  ;;  %s1008_s9 = int_to_ptr.vmem [resolvable:$true] %s1007_s9 }
   0x7   :  { %p1311_p1 = scmp.lt.s32.totalorder %s1008_s9, %s1008_s9 }
   0x8   :  { %1183 = vmatpush3.bf16.msra.mxu0 %v1395_v9  ;;  %1189 = vmatpush3.bf16.msra.mxu1 %v1395_v9 }
   0x9   :  { %1190 = vmatprep.subr.bf16.mxu0 %v1330_v3  ;;  %1196 = vmatprep.subr.bf16.mxu1 %v1330_v3 }
   0xb   :  { %1088 = vmatmul.mubr.f32.vlgmr.msra.gmra.mrb[0].mxu0 %v1332_v6 }
   0xc   :  { %1192 = vmatpush3.bf16.msra.mxu0 %v1383_v4  ;;  %1109 = vmatprep.mubr.msk.f32.mxu0 %vm1331_vm0, %v1332_v6 }
   0xd   :  { %1193 = vmatprep.subr.bf16.mxu0 %v1330_v3 }
  0x10   :  { %1195 = vmatpush3.bf16.msra.mxu0 %v1395_v9 }
  0x11   :  { %1202 = vmatprep.subr.bf16.mxu0 %v1330_v3 }
  0x82   :  { %v36_v11 = vpop.permute.xlu0 %35 }
  0x83   :  { %v79_v12 = vmul.f32 %v1416_v10, %v36_v11 }
  0x85   :  { %v94_v14 = vadd.f32 %v1422_v13, %v79_v12 }
  0xde   :  { %v185_v15 = vpop.f32.mrb[0].mxu0 }
  0xdf   :  { %v189_v16 = vadd.f32 %v185_v15, %v94_v14  ;;  %v1089_v17 = vpop.f32.mrb[1].mxu0 }
  0xe1   :  { %v1017_v18 = vmul.f32 -1.442695, %v189_v16 }
  0xe3   :  { %1242 = vpow2.f32 %v1017_v18 }
  0xed   :  { %v1243_v19 = vpop.eup %1242 }
  0xee   :  { %v193_v20 = vadd.f32 1.0, %v1243_v19 }
  0xf0   :  { %1244 = vrcp.f32 %v193_v20 }
  0xf1   :  { %1246 = vtanh.f32 %v189_v16 }
  0xfa   :  { %v1245_v21 = vpop.eup %1244 }
  0xfb   :  { %198 = vrot.lane.b32.xlu0 %v1245_v21, %s1334_s1  ;;  %v202_v22 = vmul.f32 0.0, %v1245_v21  ;;  %v1247_v23 = vpop.eup %1246 }
  0xfd   :  { %204 = vrot.lane.b32.xlu1 %v202_v22, %s1335_s10 }
 0x101   :  { %209 = vrot.lane.b32.xlu1 %v1245_v21, %s1336_s4 }
 0x105   :  { %40 = vperm.xlu1 %1241, %v25_v28  }
 0x16d   :  { %v199_v24 = vpop.permute.xlu0 %198 }
 0x16e   :  { %v201_v25 = vmul.f32 %v1247_v23, %v199_v24 }
 0x16f   :  { %v205_v26 = vpop.permute.xlu1 %204 }
 0x170   :  { %v207_v27 = vadd.f32 %v205_v26, %v201_v25 }
 0x172   :  { %1248 = vtanh.f32 %v207_v27 }
 0x173   :  { %v210_v30 = vpop.permute.xlu1 %209 }
 0x17c   :  { %v1249_v29 = vpop.eup %1248 }
 0x17d   :  { %v212_v31 = vmul.f32 %v1249_v29, %v210_v30 }
 0x17f   :  { %216 = vrot.lane.b32.xlu0 %v212_v31, %s1336_s4 }
 0x184   :  { %v41_v33 = vpop.permute.xlu1 %40 }
 0x185   :  { %v80_v34 = vmul.f32 %v1416_v10, %v41_v33 }
 0x187   :  { %v95_v35 = vadd.f32 %v1422_v13, %v80_v34 }
 0x1f1   :  { %v217_v32 = vpop.permute.xlu0 %216 }
 0x1f2   :  { %1099 = vmatmul.mubr.msk.f32.vlgmr.msra.gmra.mrb[0].mxu1 %vm115_vm1, %v217_v32 }
 0x1f3   :  { %1198 = vmatpush3.bf16.msra.mxu1 %v1383_v4  ;;  %1120 = vmatprep.mubr.msk.f32.mxu1 %vm1331_vm0, %v1332_v6 }
 0x1f4   :  { %1199 = vmatprep.subr.bf16.mxu1 %v1330_v3 }
 0x1f7   :  { %1201 = vmatpush3.bf16.msra.mxu1 %v1395_v9 }
 0x1f8   :  { %1208 = vmatprep.subr.bf16.mxu1 %v1330_v3 }
 0x2c5   :  { %v286_v36 = vpop.f32.mrb[0].mxu1 }
 0x2c6   :  { %v290_v37 = vadd.f32 %v286_v36, %v95_v35  ;;  %v1100_v38 = vpop.f32.mrb[1].mxu1 }
 0x2c8   :  { %v1019_v39 = vmul.f32 -1.442695, %v290_v37 }
 0x2ca   :  { %1250 = vpow2.f32 %v1019_v39 }
 0x2d4   :  { %v1251_v40 = vpop.eup %1250 }
 0x2d5   :  { %v294_v41 = vadd.f32 1.0, %v1251_v40 }
 0x2d7   :  { %1252 = vrcp.f32 %v294_v41 }
 0x2d8   :  { %1254 = vtanh.f32 %v290_v37 }
 0x2e1   :  { %v1253_v42 = vpop.eup %1252 }
 0x2e2   :  { %303 = vrot.lane.b32.xlu1 %v1253_v42, %s1335_s10  ;;  %299 = vrot.lane.b32.xlu0 %v1253_v42, %s1334_s1  ;;  %v1255_v44 = vpop.eup %1254 }
 0x2e6   :  { %309 = vrot.lane.b32.xlu0 %v1253_v42, %s1336_s4 }
 0x2ea   :  { %45 = vperm.xlu0 %1240, %v26_v43  }
 0x354   :  { %v304_v45 = vpop.permute.xlu1 %303  ;;  %v300_v46 = vpop.permute.xlu0 %299 }
 0x355   :  { %v306_v47 = vmul.f32 %v304_v45, %v207_v27  ;;  %v302_v48 = vmul.f32 %v1255_v44, %v300_v46  ;;  %v28_v27 = vld [vmem:[%s1559_s0 + $0x20] sm:$0xff] }
 0x357   :  { %v307_v49 = vadd.f32 %v306_v47, %v302_v48  ;;  %v29_v48 = vld [vmem:[%s1559_s0 + $0x28] sm:$0xff] }
 0x358   :  { %v310_v51 = vpop.permute.xlu0 %309 }
 0x359   :  { %1256 = vtanh.f32 %v307_v49 }
 0x363   :  { %v1257_v50 = vpop.eup %1256 }
 0x364   :  { %v312_v52 = vmul.f32 %v1257_v50, %v310_v51 }
 0x366   :  { %316 = vrot.lane.b32.xlu1 %v312_v52, %s1336_s4 }
 0x369   :  { %v46_v54 = vpop.permute.xlu0 %45 }
 0x36a   :  { %v81_v55 = vmul.f32 %v1416_v10, %v46_v54 }
 0x36c   :  { %v96_v56 = vadd.f32 %v1422_v13, %v81_v55 }
 0x3d8   :  { %v317_v53 = vpop.permute.xlu1 %316 }
 0x3d9   :  { %1110 = vmatmul.mubr.msk.f32.vlgmr.msra.gmra.mrb[2].mxu0 %vm115_vm1, %v317_v53 }
 0x3da   :  { %1204 = vmatpush3.bf16.msra.mxu0 %v1383_v4  ;;  %1131 = vmatprep.mubr.msk.f32.mxu0 %vm1331_vm0, %v1332_v6 }
 0x3db   :  { %1205 = vmatprep.subr.bf16.mxu0 %v1330_v3 }
 0x3de   :  { %1207 = vmatpush3.bf16.msra.mxu0 %v1395_v9 }
 0x3df   :  { %1214 = vmatprep.subr.bf16.mxu0 %v1330_v3 }
 0x4ac   :  { %v386_v57 = vpop.f32.mrb[2].mxu0 }
 0x4ad   :  { %v390_v58 = vadd.f32 %v386_v57, %v96_v56  ;;  %v1111_v59 = vpop.f32.mrb[3].mxu0 }
 0x4af   :  { %v1021_v60 = vmul.f32 -1.442695, %v390_v58 }
 0x4b1   :  { %1258 = vpow2.f32 %v1021_v60 }
 0x4bb   :  { %v1259_v61 = vpop.eup %1258 }
 0x4bc   :  { %v394_v62 = vadd.f32 1.0, %v1259_v61 }
 0x4be   :  { %1260 = vrcp.f32 %v394_v62 }
 0x4bf   :  { %1262 = vtanh.f32 %v390_v58 }
 0x4c8   :  { %v1261_v63 = vpop.eup %1260 }
 0x4c9   :  { %403 = vrot.lane.b32.xlu0 %v1261_v63, %s1335_s10  ;;  %399 = vrot.lane.b32.xlu1 %v1261_v63, %s1334_s1  ;;  %v1263_v1 = vpop.eup %1262 }
 0x4cd   :  { %409 = vrot.lane.b32.xlu1 %v1261_v63, %s1336_s4 }
 0x4d1   :  { %50 = vperm.xlu1 %1241, %v27_v0  }
 0x53b   :  { %v404_v2 = vpop.permute.xlu0 %403  ;;  %v400_v5 = vpop.permute.xlu1 %399 }
 0x53c   :  { %v406_v7 = vmul.f32 %v404_v2, %v307_v49  ;;  %v402_v8 = vmul.f32 %v1263_v1, %v400_v5 }
 0x53e   :  { %v407_v11 = vadd.f32 %v406_v7, %v402_v8 }
 0x53f   :  { %v410_v14 = vpop.permute.xlu1 %409 }
 0x540   :  { %1264 = vtanh.f32 %v407_v11 }
 0x54a   :  { %v1265_v12 = vpop.eup %1264 }
 0x54b   :  { %v412_v15 = vmul.f32 %v1265_v12, %v410_v14 }
 0x54d   :  { %416 = vrot.lane.b32.xlu0 %v412_v15, %s1336_s4 }
 0x550   :  { %v51_v17 = vpop.permute.xlu1 %50 }
 0x551   :  { %v82_v18 = vmul.f32 %v1416_v10, %v51_v17 }
 0x553   :  { %v97_v19 = vadd.f32 %v1422_v13, %v82_v18 }
 0x5bf   :  { %v417_v16 = vpop.permute.xlu0 %416 }
 0x5c0   :  { %1121 = vmatmul.mubr.msk.f32.vlgmr.msra.gmra.mrb[2].mxu1 %vm115_vm1, %v417_v16 }
 0x5c1   :  { %1210 = vmatpush3.bf16.msra.mxu1 %v1383_v4  ;;  %1142 = vmatprep.mubr.msk.f32.mxu1 %vm1331_vm0, %v1332_v6 }
 0x5c2   :  { %1211 = vmatprep.subr.bf16.mxu1 %v1330_v3 }
 0x5c5   :  { %1213 = vmatpush3.bf16.msra.mxu1 %v1395_v9 }
 0x5c6   :  { %1220 = vmatprep.subr.bf16.mxu1 %v1330_v3 }
 0x693   :  { %v486_v20 = vpop.f32.mrb[2].mxu1 }
 0x694   :  { %v490_v21 = vadd.f32 %v486_v20, %v97_v19  ;;  %v1122_v22 = vpop.f32.mrb[3].mxu1 }
 0x696   :  { %v1023_v23 = vmul.f32 -1.442695, %v490_v21 }
 0x698   :  { %1266 = vpow2.f32 %v1023_v23 }
 0x6a2   :  { %v1267_v24 = vpop.eup %1266 }
 0x6a3   :  { %v494_v25 = vadd.f32 1.0, %v1267_v24 }
 0x6a5   :  { %1268 = vrcp.f32 %v494_v25 }
 0x6a6   :  { %1270 = vtanh.f32 %v490_v21 }
 0x6af   :  { %v1269_v26 = vpop.eup %1268 }
 0x6b0   :  { %503 = vrot.lane.b32.xlu1 %v1269_v26, %s1335_s10  ;;  %499 = vrot.lane.b32.xlu0 %v1269_v26, %s1334_s1  ;;  %v1271_v28 = vpop.eup %1270 }
 0x6b4   :  { %509 = vrot.lane.b32.xlu0 %v1269_v26, %s1336_s4 }
 0x6b8   :  { %55 = vperm.xlu0 %1240, %v28_v27  }
 0x722   :  { %v504_v29 = vpop.permute.xlu1 %503  ;;  %v500_v30 = vpop.permute.xlu0 %499 }
 0x723   :  { %v506_v31 = vmul.f32 %v504_v29, %v407_v11  ;;  %v502_v32 = vmul.f32 %v1271_v28, %v500_v30 }
 0x725   :  { %v507_v33 = vadd.f32 %v506_v31, %v502_v32 }
 0x726   :  { %v510_v35 = vpop.permute.xlu0 %509 }
 0x727   :  { %1272 = vtanh.f32 %v507_v33 }
 0x731   :  { %v1273_v34 = vpop.eup %1272 }
 0x732   :  { %v512_v36 = vmul.f32 %v1273_v34, %v510_v35 }
 0x734   :  { %516 = vrot.lane.b32.xlu1 %v512_v36, %s1336_s4 }
 0x737   :  { %v56_v38 = vpop.permute.xlu0 %55 }
 0x738   :  { %v83_v39 = vmul.f32 %v1416_v10, %v56_v38 }
 0x73a   :  { %v98_v40 = vadd.f32 %v1422_v13, %v83_v39 }
 0x7a6   :  { %v517_v37 = vpop.permute.xlu1 %516 }
 0x7a7   :  { %1132 = vmatmul.mubr.msk.f32.vlgmr.msra.gmra.mrb[4].mxu0 %vm115_vm1, %v517_v37 }
 0x7a8   :  { %1216 = vmatpush3.bf16.msra.mxu0 %v1383_v4  ;;  %1153 = vmatprep.mubr.msk.f32.mxu0 %vm1331_vm0, %v1332_v6 }
 0x7a9   :  { %1217 = vmatprep.subr.bf16.mxu0 %v1330_v3 }
 0x7ac   :  { %1219 = vmatpush3.bf16.msra.mxu0 %v1395_v9 }
 0x7ad   :  { %1226 = vmatprep.subr.bf16.mxu0 %v1330_v3 }
 0x87a   :  { %v586_v41 = vpop.f32.mrb[4].mxu0 }
 0x87b   :  { %v590_v42 = vadd.f32 %v586_v41, %v98_v40  ;;  %v1133_v43 = vpop.f32.mrb[5].mxu0 }
 0x87d   :  { %v1025_v44 = vmul.f32 -1.442695, %v590_v42 }
 0x87f   :  { %1274 = vpow2.f32 %v1025_v44 }
 0x889   :  { %v1275_v45 = vpop.eup %1274 }
 0x88a   :  { %v594_v46 = vadd.f32 1.0, %v1275_v45 }
 0x88c   :  { %1276 = vrcp.f32 %v594_v46 }
 0x88d   :  { %1278 = vtanh.f32 %v590_v42 }
 0x896   :  { %v1277_v47 = vpop.eup %1276 }
 0x897   :  { %603 = vrot.lane.b32.xlu0 %v1277_v47, %s1335_s10  ;;  %599 = vrot.lane.b32.xlu1 %v1277_v47, %s1334_s1  ;;  %v1279_v49 = vpop.eup %1278 }
 0x89b   :  { %609 = vrot.lane.b32.xlu1 %v1277_v47, %s1336_s4 }
 0x89f   :  { %60 = vperm.xlu1 %1241, %v29_v48  }
 0x909   :  { %v604_v50 = vpop.permute.xlu0 %603  ;;  %v600_v51 = vpop.permute.xlu1 %599 }
 0x90a   :  { %v606_v52 = vmul.f32 %v604_v50, %v507_v33  ;;  %v602_v53 = vmul.f32 %v1279_v49, %v600_v51  ;;  %v915_v50 = vld [vmem:[%s1562_s3 + $0x10] sm:$0xff] }
 0x90c   :  { %v607_v54 = vadd.f32 %v606_v52, %v602_v53  ;;  %v916_v52 = vld [vmem:[%s1562_s3 + $0x18] sm:$0xff] }
 0x90d   :  { %v610_v56 = vpop.permute.xlu1 %609  ;;  %v1230_v53 = vpack.c.bf16 %v916_v52, %v915_v50 }
 0x90e   :  { %1280 = vtanh.f32 %v607_v54 }
 0x918   :  { %v1281_v55 = vpop.eup %1280 }
 0x919   :  { %v612_v57 = vmul.f32 %v1281_v55, %v610_v56 }
 0x91b   :  { %616 = vrot.lane.b32.xlu0 %v612_v57, %s1336_s4 }
 0x91e   :  { %v61_v59 = vpop.permute.xlu1 %60 }
 0x91f   :  { %v84_v60 = vmul.f32 %v1416_v10, %v61_v59 }
 0x921   :  { %v99_v61 = vadd.f32 %v1422_v13, %v84_v60 }
 0x98d   :  { %v617_v58 = vpop.permute.xlu0 %616 }
 0x98e   :  { %1143 = vmatmul.mubr.msk.f32.vlgmr.msra.gmra.mrb[4].mxu1 %vm115_vm1, %v617_v58 }
 0x98f   :  { %1222 = vmatpush3.bf16.msra.mxu1 %v1383_v4  ;;  %1164 = vmatprep.mubr.msk.f32.mxu1 %vm1331_vm0, %v1332_v6 }
 0x990   :  { %1223 = vmatprep.subr.bf16.mxu1 %v1330_v3 }
 0x993   :  { %1225 = vmatpush3.bf16.msra.mxu1 %v1395_v9  ;;  %v30_v9 = vld [vmem:[%s1559_s0 + $0x30] sm:$0xff] }
 0xa61   :  { %v686_v62 = vpop.f32.mrb[4].mxu1 }
 0xa62   :  { %v690_v63 = vadd.f32 %v686_v62, %v99_v61  ;;  %v1144_v0 = vpop.f32.mrb[5].mxu1 }
 0xa64   :  { %v1027_v1 = vmul.f32 -1.442695, %v690_v63 }
 0xa66   :  { %1282 = vpow2.f32 %v1027_v1 }
 0xa70   :  { %v1283_v2 = vpop.eup %1282 }
 0xa71   :  { %v694_v5 = vadd.f32 1.0, %v1283_v2 }
 0xa73   :  { %1284 = vrcp.f32 %v694_v5 }
 0xa74   :  { %1286 = vtanh.f32 %v690_v63 }
 0xa7d   :  { %v1285_v4 = vpop.eup %1284 }
 0xa7e   :  { %703 = vrot.lane.b32.xlu1 %v1285_v4, %s1335_s10  ;;  %699 = vrot.lane.b32.xlu0 %v1285_v4, %s1334_s1  ;;  %v1287_v7 = vpop.eup %1286 }
 0xa82   :  { %709 = vrot.lane.b32.xlu0 %v1285_v4, %s1336_s4 }
 0xa86   :  { %65 = vperm.xlu0 %1240, %v30_v9  }
 0xaf0   :  { %v704_v8 = vpop.permute.xlu1 %703  ;;  %v700_v11 = vpop.permute.xlu0 %699 }
 0xaf1   :  { %v706_v12 = vmul.f32 %v704_v8, %v607_v54  ;;  %v702_v14 = vmul.f32 %v1287_v7, %v700_v11 }
 0xaf3   :  { %v707_v15 = vadd.f32 %v706_v12, %v702_v14 }
 0xaf4   :  { %v710_v17 = vpop.permute.xlu0 %709 }
 0xaf5   :  { %1288 = vtanh.f32 %v707_v15 }
 0xaff   :  { %v1289_v16 = vpop.eup %1288 }
 0xb00   :  { %v712_v18 = vmul.f32 %v1289_v16, %v710_v17 }
 0xb02   :  { %716 = vrot.lane.b32.xlu1 %v712_v18, %s1336_s4 }
 0xb05   :  { %v66_v20 = vpop.permute.xlu0 %65 }
 0xb06   :  { %v85_v21 = vmul.f32 %v1416_v10, %v66_v20 }
 0xb08   :  { %v100_v22 = vadd.f32 %v1422_v13, %v85_v21 }
 0xb74   :  { %v717_v19 = vpop.permute.xlu1 %716 }
 0xb75   :  { %1154 = vmatmul.mubr.msk.f32.vlgmr.msra.gmra.mrb[6].mxu0 %vm115_vm1, %v717_v19 }
 0xb76   :  { %1175 = vmatprep.mubr.msk.f32.mxu0 %vm1331_vm0, %v1332_v6  ;;  %v31_v6 = vld [vmem:[%s1559_s0 + $0x38] sm:$0xff] }
 0xc48   :  { %v786_v23 = vpop.f32.mrb[6].mxu0 }
 0xc49   :  { %v790_v24 = vadd.f32 %v786_v23, %v100_v22  ;;  %v1155_v25 = vpop.f32.mrb[7].mxu0 }
 0xc4b   :  { %v1029_v26 = vmul.f32 -1.442695, %v790_v24 }
 0xc4d   :  { %1290 = vpow2.f32 %v1029_v26 }
 0xc57   :  { %v1291_v27 = vpop.eup %1290 }
 0xc58   :  { %v794_v28 = vadd.f32 1.0, %v1291_v27 }
 0xc5a   :  { %1292 = vrcp.f32 %v794_v28 }
 0xc5b   :  { %1294 = vtanh.f32 %v790_v24 }
 0xc64   :  { %v1293_v29 = vpop.eup %1292 }
 0xc65   :  { %803 = vrot.lane.b32.xlu0 %v1293_v29, %s1335_s10  ;;  %799 = vrot.lane.b32.xlu1 %v1293_v29, %s1334_s1  ;;  %v1295_v30 = vpop.eup %1294 }
 0xc69   :  { %809 = vrot.lane.b32.xlu1 %v1293_v29, %s1336_s4 }
 0xc6d   :  { %70 = vperm.xlu1 %1241, %v31_v6  }
 0xcd7   :  { %v804_v31 = vpop.permute.xlu0 %803  ;;  %v800_v32 = vpop.permute.xlu1 %799 }
 0xcd8   :  { %v806_v33 = vmul.f32 %v804_v31, %v707_v15  ;;  %v802_v34 = vmul.f32 %v1295_v30, %v800_v32 }
 0xcda   :  { %v807_v35 = vadd.f32 %v806_v33, %v802_v34 }
 0xcdb   :  { %v810_v37 = vpop.permute.xlu1 %809 }
 0xcdc   :  { %1296 = vtanh.f32 %v807_v35 }
 0xce6   :  { %v1297_v36 = vpop.eup %1296 }
 0xce7   :  { %v812_v38 = vmul.f32 %v1297_v36, %v810_v37 }
 0xce9   :  { %816 = vrot.lane.b32.xlu0 %v812_v38, %s1336_s4 }
 0xcec   :  { %v71_v40 = vpop.permute.xlu1 %70 }
 0xced   :  { %v86_v41 = vmul.f32 %v1416_v10, %v71_v40  ;;  %v913_v10 = vld [vmem:[%s1562_s3] sm:$0xff] }
 0xcef   :  { %v101_v42 = vadd.f32 %v1422_v13, %v86_v41  ;;  %v914_v13 = vld [vmem:[%s1562_s3 + $0x8] sm:$0xff] }
 0xcf0   :  { %v1227_v51 = vpack.c.bf16 %v914_v13, %v913_v10 }
 0xcf2   :  { %1228 = vmatpush3.bf16.msra.mxu0 %v1227_v51 }
 0xcf3   :  { %1229 = vmatprep.subr.bf16.mxu0 %v1330_v3  ;;  %v1032_v3 = vld [vmem:[%s1564_s5] ss:$0 sm:$0xff] }
 0xcf6   :  { %1231 = vmatpush3.bf16.msra.mxu0 %v1230_v53 }
 0xd5b   :  { %v817_v39 = vpop.permute.xlu0 %816 }
 0xd5c   :  { %1165 = vmatmul.mubr.msk.f32.vlgmr.msra.gmra.mrb[6].mxu1 %vm115_vm1, %v817_v39 }
 0xe2f   :  { %v886_v43 = vpop.f32.mrb[6].mxu1 }
 0xe30   :  { %v890_v44 = vadd.f32 %v886_v43, %v101_v42  ;;  %v1166_v45 = vpop.f32.mrb[7].mxu1 }
 0xe32   :  { %v1031_v46 = vmul.f32 -1.442695, %v890_v44 }
 0xe34   :  { %1298 = vpow2.f32 %v1031_v46 }
 0xe3e   :  { %v1299_v47 = vpop.eup %1298 }
 0xe3f   :  { %v894_v48 = vadd.f32 1.0, %v1299_v47 }
 0xe41   :  { %1300 = vrcp.f32 %v894_v48 }
 0xe42   :  { %1302 = vtanh.f32 %v890_v44 }
 0xe4b   :  { %v1301_v49 = vpop.eup %1300 }
 0xe4c   :  { %903 = vrot.lane.b32.xlu1 %v1301_v49, %s1335_s10  ;;  %899 = vrot.lane.b32.xlu0 %v1301_v49, %s1334_s1  ;;  %v1303_v54 = vpop.eup %1302  ;;  %s1306_s1 = scalar_lea.vmem %s1008_s9, 128 }
 0xe4d   :  { %p1307_p0 = scmp.ne.s32.totalorder %s1008_s9, %s1306_s1  ;;  %p1312_p2 = scmp.lt.s32.totalorder %s1306_s1, %s1306_s1 }
 0xe4f   :  { %p1313_p3 = por %p1312_p2, %p1311_p1 }
 0xe50   :  { %909 = vrot.lane.b32.xlu0 %v1301_v49, %s1336_s4 }
 0xe51   :  { %p1314_p4 = pnand %p1313_p3, %p1307_p0 }
 0xebe   :  { %v904_v55 = vpop.permute.xlu1 %903  ;;  %v900_v56 = vpop.permute.xlu0 %899 }
 0xebf   :  { %v906_v57 = vmul.f32 %v904_v55, %v807_v35  ;;  %v902_v58 = vmul.f32 %v1303_v54, %v900_v56 }
 0xec1   :  { %v907_v59 = vadd.f32 %v906_v57, %v902_v58 }
 0xec2   :  { %v910_v61 = vpop.permute.xlu0 %909 }
 0xec3   :  { %1304 = vtanh.f32 %v907_v59 }
 0xecd   :  { %v1305_v60 = vpop.eup %1304 }
 0xece   :  { %v912_v62 = vmul.f32 %v1305_v60, %v910_v61 }
 0xed0   :  { %925 = vrot.lane.b32.xlu1 %v912_v62, %s1336_s4 }
 0xf42   :  { %v926_v63 = vpop.permute.xlu1 %925 }
 0xf43   :  { %1176 = vmatmul.mubr.msk.f32.vlgmr.msra.gmra.mrb[8].mxu0 %vm115_vm1, %v926_v63 }
0x1016   :  { %v995_v0 = vpop.f32.mrb[8].mxu0 }
0x1017   :  { %v996_v1 = vadd.f32 %v1032_v3, %v995_v0  ;;  %v1177_v2 = vpop.f32.mrb[9].mxu0 }
0x1019   :  { %1000 = vst.msk [vmem:[#allocation3] sm:$0xff] %vm999_vm2, %v996_v1 }
0x101a   :  { %1317 = shalt.err (!%p1314_p4)
}
0x101b   :  { %s1318_s11 = scalar_lea.hbm %s1565_s6, 128 }
0x101c   :  { %p1319_p5 = scmp.ne.s32.totalorder %s1565_s6, %s1318_s11  ;;  %p1322_p6 = scmp.lt.u32.totalorder %s1318_s11, %s1565_s6 }
0x101e   :  { %p1324_p7 = pnand %p1322_p6, %p1319_p5 }
0x1020   :  { %1327 = shalt.err (!%p1324_p7)
}
0x1021   :  { %1010 = dma.vmem_to_hbm [thread:$0]  %s1008_s9, 128, %s1565_s6, [#allocation4]  }
0x1022   :  { %1328 = dma.done.wait [#allocation4], 128  }
0x1023   :  { %1329 = vsyncadd [#allocation4], 4294967168 }
0x1024   :  { %1014 = vsyncpa [#allocation4], 1 }

</bundles_post_ra>
